<compile_context>
chip_gen: v5e
topology: v5e:2x2
jax: 0.10.0
libtpu: 0.0.40
codegen_flags: <defaults>
</compile_context>

<pallas_src>
import functools

import jax
import jax.numpy as jnp
from jax.experimental import pallas as pl
from jax.experimental.pallas import tpu as pltpu

GEM_EPS = 1e-6    # GeM eps (clamp floor)
L2_EPS = 1e-12    # F.normalize eps


def _embed_block_kernel(x_ref, w_ref, s_ref, m_ref, out_ref, *, p):
    """One batch block per grid step.

    x_ref:   VMEM (bblk*HW, 9*Cin)  im2col LHS (bf16 or f32), lane-dense K
    w_ref:   VMEM (9*Cin, Cpad)     fused conv weight, lane-padded output channels
    s_ref:   VMEM (bblk, bblk*HW)   f32 block-diagonal 1/HW pooling matrix
    m_ref:   VMEM (1, Cpad)         f32 valid-channel mask (1.0 real / 0.0 pad)
    out_ref: VMEM (1, bblk, Cpad)   f32 L2-normalized descriptors (dense slab)
    """
    # Backbone stand-in: 3x3 conv (stride 1, pad 1) as ONE fused K=9*Cin MXU matmul.
    acc = jnp.dot(x_ref[...], w_ref[...], preferred_element_type=jnp.float32)

    # ReLU fused with GeM clamp(min=eps): max(max(x, 0), eps) == max(x, eps).
    clamped = jnp.maximum(acc, GEM_EPS)

    # GeM elementwise x ** p: integer p specialised to repeated VPU multiplies.
    p_int = int(round(p))
    if abs(p - p_int) < 1e-12 and p_int >= 1:
        powed = clamped
        for _ in range(p_int - 1):
            powed = powed * clamped
    else:
        powed = jnp.exp(p * jnp.log(clamped))        # general (static) p, EUP path

    # Spatial mean per image on the otherwise-idle MXU: (bblk, bblk*HW) @ (bblk*HW, Cpad).
    pooled = jnp.dot(s_ref[...], powed, preferred_element_type=jnp.float32)

    # Mask padded lanes with 1.0 BEFORE the log (avoid log(0)); ** (1/p) touches only
    # the tiny pooled tile; zero the padded lanes again afterwards.
    m = m_ref[...]                                   # (1, Cpad) broadcasts over bblk
    pooled = pooled * m + (1.0 - m)
    desc = jnp.exp(jnp.log(pooled) * (1.0 / p)) * m

    # F.normalize: x / max(||x||_2, eps)  ==  x * rsqrt(max(||x||^2, eps^2)).
    sq = jnp.sum(desc * desc, axis=1, keepdims=True)
    out_ref[0, :, :] = desc * jax.lax.rsqrt(jnp.maximum(sq, L2_EPS * L2_EPS))


def _pick_block_b(N, HW, K, Cpad, in_bytes, vmem_budget_bytes):
    """Largest batch block fitting the per-step VMEM budget, while keeping >= 2 grid
    steps so v7x's two TensorCores both get work under "parallel" semantics."""
    best = 1
    for bb in range(1, N + 1):
        if N % bb:
            continue
        if N >= 2 and N // bb < 2:                     # keep grid length >= 2 (v7x)
            continue
        if (bb * HW) % 8 != 0:                         # sublane alignment
            continue
        step_bytes = (2 * bb * HW * K * in_bytes       # double-buffered im2col tile
                      + 2 * bb * HW * Cpad * 4         # f32 acc + x**p slabs
                      + 2 * bb * Cpad * 4              # double-buffered output slab
                      + bb * bb * HW * 4)              # resident pooling matrix
        if step_bytes <= vmem_budget_bytes:
            best = bb
    return best


def embed(x_nchw, w_oihw, gem_p, *, block_b=None, matmul_dtype=jnp.bfloat16,
          vmem_budget_bytes=20 << 20):
    """Embedder.forward for a stacked batch: conv+ReLU -> GeM pool -> L2 norm."""
    N, Cin, H, W = x_nchw.shape
    Cout = w_oihw.shape[0]
    HW = H * W
    K = 9 * Cin
    Cpad = -(-Cout // 128) * 128                       # lane-pad output channels
    in_bytes = jnp.dtype(matmul_dtype).itemsize

    if block_b is None:
        block_b = _pick_block_b(N, HW, K, Cpad, in_bytes, vmem_budget_bytes)
    assert N % block_b == 0
    assert (block_b * HW) % 8 == 0, "block_b*H*W must be a multiple of 8 sublanes"
    G = N // block_b

    # --- wrapper-side im2col: lane-dense LHS with K = 9*Cin on the lane axis. ---
    x = jnp.transpose(x_nchw, (0, 2, 3, 1)).astype(jnp.float32)
    xp = jnp.pad(x, ((0, 0), (1, 1), (1, 1), (0, 0)))         # (N, H+2, W+2, Cin)
    taps = [xp[:, dh:dh + H, dw:dw + W, :] for dh in range(3) for dw in range(3)]
    lhs = jnp.stack(taps, axis=3).reshape(N * HW, K).astype(matmul_dtype)

    # (Cout, Cin, 3, 3) -> (kh, kw, Cin, Cout) -> (9*Cin, Cpad), lane-padded.
    wk = jnp.transpose(w_oihw, (2, 3, 1, 0)).reshape(K, Cout)
    wk = jnp.pad(wk, ((0, 0), (0, Cpad - Cout))).astype(matmul_dtype)

    # Block-diagonal 1/HW pooling matrix: pooled = S @ (x**p) on the MXU.
    row = jax.lax.broadcasted_iota(jnp.int32, (block_b, block_b * HW), 0)
    col = jax.lax.broadcasted_iota(jnp.int32, (block_b, block_b * HW), 1)
    pool_mat = jnp.where(col // HW == row, 1.0 / HW, 0.0).astype(jnp.float32)

    # Valid-channel mask (built once, resident).
    cmask = (jnp.arange(Cpad) < Cout).astype(jnp.float32).reshape(1, Cpad)

    kernel = functools.partial(_embed_block_kernel, p=float(gem_p))

    out = pl.pallas_call(
        kernel,
        out_shape=jax.ShapeDtypeStruct((G, block_b, Cpad), jnp.float32),
        grid=(G,),
        in_specs=[
            pl.BlockSpec((block_b * HW, K), lambda g: (g, 0)),          # im2col tile
            pl.BlockSpec((K, Cpad), lambda g: (0, 0)),                  # weights (resident)
            pl.BlockSpec((block_b, block_b * HW), lambda g: (0, 0)),    # pooling matrix
            pl.BlockSpec((1, Cpad), lambda g: (0, 0)),                  # channel mask
        ],
        out_specs=pl.BlockSpec((1, block_b, Cpad), lambda g: (g, 0, 0)),
        compiler_params=pltpu.CompilerParams(
            dimension_semantics=("parallel",),
            vmem_limit_bytes=32 * 1024 * 1024),   # safe on v5e/v6e (128 MiB) and v7x (64 MiB)
    )(lhs, wk, pool_mat, cmask)

    return out.reshape(N, Cpad)[:, :Cout]


def siamese_forward(augs1, augs2, w_oihw, gem_p, matmul_dtype=jnp.bfloat16):
    """siamese_network.forward: shared-weight embedder, both views in one call."""
    B = augs1.shape[0]
    both = jnp.concatenate([augs1, augs2], axis=0)     # shared weights -> one kernel
    descs = embed(both, w_oihw, gem_p, matmul_dtype=matmul_dtype)
    return descs[:B], descs[B:]


def _reference(augs1, augs2, w_oihw, p):
    """Pure-JAX f32 reference mirroring the PyTorch forward (for sanity checking)."""
    def one(x):
        H, W = x.shape[2], x.shape[3]
        xp = jnp.pad(x.astype(jnp.float32), ((0, 0), (0, 0), (1, 1), (1, 1)))
        out = 0.0
        for kh in range(3):
            for kw in range(3):
                out = out + jnp.einsum('bchw,oc->bohw',
                                       xp[:, :, kh:kh + H, kw:kw + W],
                                       w_oihw[:, :, kh, kw])
        feat = jnp.maximum(out, 0.0)
        pooled = jnp.mean(jnp.maximum(feat, GEM_EPS) ** p, axis=(2, 3)) ** (1.0 / p)
        nrm = jnp.maximum(jnp.linalg.norm(pooled, axis=1, keepdims=True), L2_EPS)
        return pooled / nrm
    return one(augs1), one(augs2)


if __name__ == "__main__":
    # Small shapes consistent with the module's forward (NCHW image pairs).
    B, Cin, H, W = 2, 4, 16, 16
    Cout = 32

    key = jax.random.PRNGKey(0)
    k1, k2, k3 = jax.random.split(key, 3)

    augs1 = jax.random.normal(k1, (B, Cin, H, W), dtype=jnp.float32)
    augs2 = jax.random.normal(k2, (B, Cin, H, W), dtype=jnp.float32)

    # Deterministic synthetic conv weight in PyTorch layout (Cout, Cin, 3, 3).
    w_oihw = 0.1 * jax.random.normal(k3, (Cout, Cin, 3, 3), dtype=jnp.float32)

    fwd = jax.jit(siamese_forward, static_argnames=("gem_p", "matmul_dtype"))

    # Default (bf16 matmul operands, f32 accumulation).
    left, right = fwd(augs1, augs2, w_oihw, gem_p=3.0)
    jax.block_until_ready((left, right))

    # Full-f32 variant for a tight exactness check against the reference.
    left32, right32 = fwd(augs1, augs2, w_oihw, gem_p=3.0, matmul_dtype=jnp.float32)
    jax.block_until_ready((left32, right32))

    assert left.shape == (B, Cout) and right.shape == (B, Cout)
    # descriptors are L2-normalized
    assert jnp.allclose(jnp.linalg.norm(left, axis=1), 1.0, atol=1e-3)
    assert jnp.allclose(jnp.linalg.norm(right, axis=1), 1.0, atol=1e-3)

    ref_l, ref_r = _reference(augs1, augs2, w_oihw, 3.0)
    # f32 kernel matches the pure-JAX reference of the PyTorch forward tightly
    assert jnp.allclose(left32, ref_l, atol=1e-4, rtol=1e-4)
    assert jnp.allclose(right32, ref_r, atol=1e-4, rtol=1e-4)
    # bf16-operand kernel matches within bf16 rounding
    assert jnp.allclose(left, ref_l, atol=2e-2, rtol=2e-2)
    assert jnp.allclose(right, ref_r, atol=2e-2, rtol=2e-2)

    print("KERNEL_OK")
</pallas_src>

<mosaic_0001>
module attributes {stable_mosaic.version = 11 : i64} {
  func.func @_embed_block_kernel(%arg0: i32, %arg1: memref<512x36xbf16, #tpu.memory_space<vmem>>, %arg2: memref<36x128xbf16, #tpu.memory_space<vmem>>, %arg3: memref<2x512xf32, #tpu.memory_space<vmem>>, %arg4: memref<1x128xf32, #tpu.memory_space<vmem>>, %arg5: memref<1x2x128xf32, #tpu.memory_space<vmem>>) attributes {dimension_semantics = [#tpu.dimension_semantics<parallel>], iteration_bounds = array<i64: 2>, scalar_prefetch = 0 : i64, scratch_operands = 0 : i64, tpu.core_type = #tpu.core_type<tc>, window_params = [{transform_indices = @transform_0, window_bounds = array<i64: 512, 36>}, {pipeline_mode = #tpu.pipeline_mode<synchronous>, transform_indices = @transform_1, window_bounds = array<i64: 36, 128>}, {pipeline_mode = #tpu.pipeline_mode<synchronous>, transform_indices = @transform_2, window_bounds = array<i64: 2, 512>}, {pipeline_mode = #tpu.pipeline_mode<synchronous>, transform_indices = @transform_3, window_bounds = array<i64: 1, 128>}, {transform_indices = @transform_4, window_bounds = array<i64: 1, 2, 128>}]} {
    %c0 = arith.constant 0 : index
    %c0_0 = arith.constant 0 : index
    %0 = vector.load %arg1[%c0, %c0_0] : memref<512x36xbf16, #tpu.memory_space<vmem>>, vector<512x36xbf16>
    %c0_1 = arith.constant 0 : index
    %c0_2 = arith.constant 0 : index
    %1 = vector.load %arg2[%c0_1, %c0_2] : memref<36x128xbf16, #tpu.memory_space<vmem>>, vector<36x128xbf16>
    %cst = arith.constant dense<0.000000e+00> : vector<512x128xf32>
    %2 = tpu.matmul %0, %1, %cst {dimension_numbers = #tpu.dot_dimension_numbers<[1], [0], [0], [1], [0, 0, 1, 1], [], []>} : vector<512x36xbf16>, vector<36x128xbf16>, vector<512x128xf32> -> vector<512x128xf32>
    %cst_3 = arith.constant 9.99999997E-7 : f32
    %3 = vector.broadcast %cst_3 : f32 to vector<512x128xf32>
    %4 = arith.maximumf %2, %3 : vector<512x128xf32>
    %5 = arith.mulf %4, %4 : vector<512x128xf32>
    %6 = arith.mulf %5, %4 : vector<512x128xf32>
    %c0_4 = arith.constant 0 : index
    %c0_5 = arith.constant 0 : index
    %7 = vector.load %arg3[%c0_4, %c0_5] : memref<2x512xf32, #tpu.memory_space<vmem>>, vector<2x512xf32>
    %cst_6 = arith.constant dense<0.000000e+00> : vector<2x128xf32>
    %8 = tpu.matmul %7, %6, %cst_6 {dimension_numbers = #tpu.dot_dimension_numbers<[1], [0], [0], [1], [0, 0, 1, 1], [], []>} : vector<2x512xf32>, vector<512x128xf32>, vector<2x128xf32> -> vector<2x128xf32>
    %c0_7 = arith.constant 0 : index
    %c0_8 = arith.constant 0 : index
    %9 = vector.load %arg4[%c0_7, %c0_8] : memref<1x128xf32, #tpu.memory_space<vmem>>, vector<1x128xf32>
    %10 = vector.broadcast %9 : vector<1x128xf32> to vector<2x128xf32>
    %11 = arith.mulf %8, %10 : vector<2x128xf32>
    %cst_9 = arith.constant 1.000000e+00 : f32
    %12 = vector.broadcast %cst_9 : f32 to vector<1x128xf32>
    %13 = arith.subf %12, %9 : vector<1x128xf32>
    %14 = vector.broadcast %13 : vector<1x128xf32> to vector<2x128xf32>
    %15 = arith.addf %11, %14 : vector<2x128xf32>
    %16 = math.log %15 : vector<2x128xf32>
    %cst_10 = arith.constant 0.333333343 : f32
    %17 = vector.broadcast %cst_10 : f32 to vector<2x128xf32>
    %18 = arith.mulf %16, %17 : vector<2x128xf32>
    %19 = math.exp %18 : vector<2x128xf32>
    %20 = vector.broadcast %9 : vector<1x128xf32> to vector<2x128xf32>
    %21 = arith.mulf %19, %20 : vector<2x128xf32>
    %22 = arith.mulf %21, %21 : vector<2x128xf32>
    %cst_11 = arith.constant dense<0.000000e+00> : vector<2xf32>
    %23 = vector.multi_reduction <add>, %22, %cst_11 [1] : vector<2x128xf32> to vector<2xf32>
    %24 = vector.shape_cast %23 : vector<2xf32> to vector<2x1xf32>
    %cst_12 = arith.constant 1.000000e-24 : f32
    %25 = vector.broadcast %cst_12 : f32 to vector<2x1xf32>
    %26 = arith.maximumf %24, %25 : vector<2x1xf32>
    %27 = math.rsqrt %26 : vector<2x1xf32>
    %28 = vector.broadcast %27 : vector<2x1xf32> to vector<2x128xf32>
    %29 = arith.mulf %21, %28 : vector<2x128xf32>
    %c0_13 = arith.constant 0 : index
    %c0_14 = arith.constant 0 : index
    %c0_15 = arith.constant 0 : index
    %30 = vector.load %arg5[%c0_13, %c0_14, %c0_15] : memref<1x2x128xf32, #tpu.memory_space<vmem>>, vector<1x2x128xf32>
    %31 = vector.shape_cast %30 : vector<1x2x128xf32> to vector<2x128xf32>
    %32 = vector.shape_cast %29 : vector<2x128xf32> to vector<1x2x128xf32>
    tpu.vector_store %arg5[%c0_13, %c0_14, %c0_15], %32 {strides = array<i32>} : memref<1x2x128xf32, #tpu.memory_space<vmem>>, vector<1x2x128xf32>,
    return
  }
  func.func @transform_0(%arg0: i32) -> (i32, i32) {
    %c0_i32 = arith.constant 0 : i32
    %c0_i32_0 = arith.constant 0 : i32
    return %arg0, %c0_i32 : i32, i32
  }
  func.func @transform_1(%arg0: i32) -> (i32, i32) {
    %c0_i32 = arith.constant 0 : i32
    %c0_i32_0 = arith.constant 0 : i32
    %c0_i32_1 = arith.constant 0 : i32
    return %c0_i32, %c0_i32_0 : i32, i32
  }
  func.func @transform_2(%arg0: i32) -> (i32, i32) {
    %c0_i32 = arith.constant 0 : i32
    %c0_i32_0 = arith.constant 0 : i32
    %c0_i32_1 = arith.constant 0 : i32
    return %c0_i32, %c0_i32_0 : i32, i32
  }
  func.func @transform_3(%arg0: i32) -> (i32, i32) {
    %c0_i32 = arith.constant 0 : i32
    %c0_i32_0 = arith.constant 0 : i32
    %c0_i32_1 = arith.constant 0 : i32
    return %c0_i32, %c0_i32_0 : i32, i32
  }
  func.func @transform_4(%arg0: i32) -> (i32, i32, i32) {
    %c0_i32 = arith.constant 0 : i32
    %c0_i32_0 = arith.constant 0 : i32
    %c0_i32_1 = arith.constant 0 : i32
    return %arg0, %c0_i32, %c0_i32_0 : i32, i32, i32
  }
}

</mosaic_0001>

<bundles_post_ra>
// kernel: siamese_forward.1
= control target key start
LH: loop header
LB: loop body
LE: loop exit
PB: predicated region body
PF: predicated region fallthrough
CT: control target
= control target key end

     0   :  { %s1351_s15 = smov 0   ;;  %s1567_s0 = inlined_call_operand.vmem [shape: bf16[1024,36], index: 0, kind: input, shape index: {}]   ;;  %s1568_s1 = inlined_call_operand.vmem [shape: bf16[36,128], index: 1, kind: input, shape index: {}]   ;;  %s1569_s2 = inlined_call_operand.vmem [shape: f32[2,512], index: 2, kind: input, shape index: {}]   ;;  %s1570_s3 = inlined_call_operand.vmem [shape: f32[1,128], index: 3, kind: input, shape index: {}]   ;;  %s1571_s4 = inlined_call_operand.vmem [shape: f32[2,2,128], index: 4, kind: output, shape index: {}]  }
   0x1 LB: > { %s1357_s16 = sadd.s32 4294967295, %s1324_s15   ;;  %p1086_p0 = scmp.ge.s32.totalorder %s1324_s15, 1  ;;  %s1324_s15 = sphi %s1351_s15, %s14_s15  }
   0x2   : > { %p163_p1 = scmp.lt.s32.totalorder %s1324_s15, 3 }
   0x4   : > { %p164_p2 = pnand %p1086_p0, %p163_p1 }
   0x5   : > { %s1087_s19 = sshll.u32 (!%p164_p2), %s1357_s16, 6  ;;  %p194_p4 = scmp.lt.s32.totalorder (!%p164_p2), %s1357_s16, 1 }
   0x6   : > { %167 = sbr.rel (%p164_p2) target bundleno = 639 (0x27f), region = 36  ;;  %p189_p3 = scmp.lt.s32.totalorder (!%p164_p2), %s1087_s19, 127 }
   0xb   : > { %v267_v0 = vld [vmem:[%s1568_s1 + $0x10] sm:$0x3]  ;;  %vm540_vm0 = vcmask 1041408   ;;  %s1573_s19 = smov (!%p189_p3, %s1087_s19), 127  ;;  %v1293_v4 = vld [vmem:[%s1568_s1 + $0x8] sm:$0xff]  ;;  %v1292_v5 = vld [vmem:[%s1568_s1] sm:$0xff] }
   0xc   : > { %v437_v1 = vunpack.c.l.b16 %v267_v0  ;;  %s1088_s22 = sshll.u32 %s1573_s19, 2  ;;  %vm443_vm1 = vcmask 293888   ;;  %s1575_s16 = smov (!%p194_p4, %s1357_s16), 1 }
   0xd   : > { %s1375_s27 = scalar_lea.vmem %s1567_s0, %s1088_s22  ;;  %s1089_s8 = sshll.u32 %s1575_s16, 1 }
   0xe   : > { %v440_v2 = vpack.c.b16 %v437_v1, %v437_v1  ;;  %v1260_v6 = vld [vmem:[%s1375_s27] sm:$0xff]  ;;  %v1274_v7 = vld [vmem:[%s1375_s27 + $0x70] sm:$0xff]  ;;  %v1283_v8 = vld [vmem:[%s1375_s27 + $0xb8] sm:$0xff]  ;;  %s197_s11 = scalar_lea.vmem %s1571_s4, %s1089_s8 }
   0xf   : > { %v1270_v9 = vld [vmem:[%s1375_s27 + $0x50] sm:$0xff]  ;;  %v1261_v10 = vld [vmem:[%s1375_s27 + $0x8] sm:$0xff]  ;;  %v1275_v11 = vld [vmem:[%s1375_s27 + $0x78] sm:$0xff] }
  0x10   : > { %v542_v3 = vsel %vm540_vm0, %v440_v2, 0  ;;  %v1284_v12 = vld [vmem:[%s1375_s27 + $0xc0] sm:$0xff]  ;;  %v1271_v13 = vld [vmem:[%s1375_s27 + $0x58] sm:$0xff]  ;;  %v1262_v14 = vld [vmem:[%s1375_s27 + $0x10] sm:$0xff] }
  0x11   : > { %549 = vmatpush.bf16.msra.mxu0 %v542_v3  ;;  %1295 = vmatpush.bf16.msra.mxu2 %v542_v3  ;;  %v1276_v15 = vld [vmem:[%s1375_s27 + $0x80] sm:$0xff]  ;;  %v1285_v16 = vld [vmem:[%s1375_s27 + $0xc8] sm:$0xff]  ;;  %v1263_v18 = vld [vmem:[%s1375_s27 + $0x18] sm:$0xff] }
  0x12   : > { %1296 = vmatpush.bf16.msra.mxu3 %v542_v3  ;;  %1294 = vmatpush.bf16.msra.mxu1 %v542_v3  ;;  %v1272_v17 = vld [vmem:[%s1375_s27 + $0x60] sm:$0xff]  ;;  %v1277_v19 = vld [vmem:[%s1375_s27 + $0x88] sm:$0xff]  ;;  %v1286_v20 = vld [vmem:[%s1375_s27 + $0xd0] sm:$0xff] }
  0x13   : > { %v1273_v21 = vld [vmem:[%s1375_s27 + $0x68] sm:$0xff]  ;;  %v1264_v22 = vld [vmem:[%s1375_s27 + $0x20] sm:$0xff]  ;;  %v1278_v23 = vld [vmem:[%s1375_s27 + $0x90] sm:$0xff] }
  0x14   : > { %v1287_v24 = vld [vmem:[%s1375_s27 + $0xd8] sm:$0xff]  ;;  %v1265_v25 = vld [vmem:[%s1375_s27 + $0x28] sm:$0xff]  ;;  %v1288_v27 = vld [vmem:[%s1375_s27 + $0xe0] sm:$0xff] }
  0x15   : > { %550 = vmatpush.bf16.msra.mxu0 %v1293_v4  ;;  %1298 = vmatpush.bf16.msra.mxu2 %v1293_v4  ;;  %v1279_v26 = vld [vmem:[%s1375_s27 + $0x98] sm:$0xff]  ;;  %v1266_v28 = vld [vmem:[%s1375_s27 + $0x30] sm:$0xff]  ;;  %v1280_v29 = vld [vmem:[%s1375_s27 + $0xa0] sm:$0xff] }
  0x16   : > { %1299 = vmatpush.bf16.msra.mxu3 %v1293_v4  ;;  %1297 = vmatpush.bf16.msra.mxu1 %v1293_v4  ;;  %v1289_v30 = vld [vmem:[%s1375_s27 + $0xe8] sm:$0xff]  ;;  %v1267_v31 = vld [vmem:[%s1375_s27 + $0x38] sm:$0xff]  ;;  %v1290_v33 = vld [vmem:[%s1375_s27 + $0xf0] sm:$0xff] }
  0x17   : > { %v1281_v32 = vld [vmem:[%s1375_s27 + $0xa8] sm:$0xff]  ;;  %v1282_v34 = vld [vmem:[%s1375_s27 + $0xb0] sm:$0xff]  ;;  %v1268_v35 = vld [vmem:[%s1375_s27 + $0x40] sm:$0xff] }
  0x18   : > { %v1291_v37 = vld [vmem:[%s1375_s27 + $0xf8] sm:$0xff]  ;;  %v1269_v46 = vld [vmem:[%s1375_s27 + $0x48] sm:$0xff] }
  0x19   : > { %551 = vmatpush.bf16.msra.mxu0 %v1292_v5  ;;  %1301 = vmatpush.bf16.msra.mxu2 %v1292_v5 }
  0x1a   : > { %1302 = vmatpush.bf16.msra.mxu3 %v1292_v5  ;;  %1300 = vmatpush.bf16.msra.mxu1 %v1292_v5 }
  0x1c   : > { %1226 = vmatmul.msk.bf16.vlgmr.msra.gmra.mxu0 %vm443_vm1, %v1260_v6  ;;  %1240 = vmatmul.msk.bf16.vlgmr.msra.gmra.mxu2 %vm443_vm1, %v1274_v7 }
  0x1d   : > { %1249 = vmatmul.msk.bf16.vlgmr.msra.gmra.mxu3 %vm443_vm1, %v1283_v8  ;;  %1236 = vmatmul.msk.bf16.vlgmr.msra.gmra.mxu1 %vm443_vm1, %v1270_v9 }
  0x2c   : > { %1227 = vmatmul.msk.bf16.gmra.mxu0 %vm443_vm1, %v1261_v10  ;;  %1241 = vmatmul.msk.bf16.gmra.mxu2 %vm443_vm1, %v1275_v11 }
  0x2d   : > { %1250 = vmatmul.msk.bf16.gmra.mxu3 %vm443_vm1, %v1284_v12  ;;  %1237 = vmatmul.msk.bf16.gmra.mxu1 %vm443_vm1, %v1271_v13 }
  0x3c   : > { %1228 = vmatmul.msk.bf16.gmra.mxu0 %vm443_vm1, %v1262_v14  ;;  %1242 = vmatmul.msk.bf16.gmra.mxu2 %vm443_vm1, %v1276_v15 }
  0x3d   : > { %1251 = vmatmul.msk.bf16.gmra.mxu3 %vm443_vm1, %v1285_v16  ;;  %1238 = vmatmul.msk.bf16.gmra.mxu1 %vm443_vm1, %v1272_v17 }
  0x4c   : > { %1229 = vmatmul.msk.bf16.gmra.mxu0 %vm443_vm1, %v1263_v18  ;;  %1243 = vmatmul.msk.bf16.gmra.mxu2 %vm443_vm1, %v1277_v19 }
  0x4d   : > { %1252 = vmatmul.msk.bf16.gmra.mxu3 %vm443_vm1, %v1286_v20  ;;  %1239 = vmatmul.msk.bf16.gmra.mxu1 %vm443_vm1, %v1273_v21 }
  0x5c   : > { %1230 = vmatmul.msk.bf16.gmra.mxu0 %vm443_vm1, %v1264_v22  ;;  %1244 = vmatmul.msk.bf16.gmra.mxu2 %vm443_vm1, %v1278_v23 }
  0x5d   : > { %1253 = vmatmul.msk.bf16.gmra.mxu3 %vm443_vm1, %v1287_v24 }
  0x6c   : > { %1231 = vmatmul.msk.bf16.gmra.mxu0 %vm443_vm1, %v1265_v25  ;;  %1245 = vmatmul.msk.bf16.gmra.mxu2 %vm443_vm1, %v1279_v26 }
  0x6d   : > { %1254 = vmatmul.msk.bf16.gmra.mxu3 %vm443_vm1, %v1288_v27 }
  0x7c   : > { %1232 = vmatmul.msk.bf16.gmra.mxu0 %vm443_vm1, %v1266_v28  ;;  %1246 = vmatmul.msk.bf16.gmra.mxu2 %vm443_vm1, %v1280_v29 }
  0x7d   : > { %1255 = vmatmul.msk.bf16.gmra.mxu3 %vm443_vm1, %v1289_v30 }
  0x8c   : > { %1233 = vmatmul.msk.bf16.gmra.mxu0 %vm443_vm1, %v1267_v31  ;;  %1247 = vmatmul.msk.bf16.gmra.mxu2 %vm443_vm1, %v1281_v32 }
  0x8d   : > { %1256 = vmatmul.msk.bf16.gmra.mxu3 %vm443_vm1, %v1290_v33 }
  0x99   : > { %v1435_v36 = vpop.f32.mrf.mxu0 }
  0x9a   : > { %v1438_v38 = vpop.f32.mrf.mxu1 }
  0x9c   : > { %1248 = vmatmul.msk.bf16.gmra.mxu2 %vm443_vm1, %v1282_v34  ;;  %1234 = vmatmul.msk.bf16.gmra.mxu0 %vm443_vm1, %v1268_v35 }
  0x9d   : > { %1257 = vmatmul.msk.bf16.gmra.mxu3 %vm443_vm1, %v1291_v37 }
  0x9f   : > { %v623_v39 = vpop.f32.mrf.mxu2 }
  0xa0   : > { %v668_v40 = vpop.f32.mrf.mxu3  ;;  %v741_v0 = vmax.f32 %v623_v39, 1e-06 }
  0xa1   : > { %v1443_v41 = vpop.f32.mrf.mxu0  ;;  %v759_v44 = vmax.f32 %v668_v40, 1e-06 }
  0xa2   : > { %v1445_v42 = vpop.f32.mrf.mxu1  ;;  %v805_v6 = vmul.f32 %v741_v0, %v741_v0 }
  0xa3   : > { %v823_v50 = vmul.f32 %v759_v44, %v759_v44  ;;  %v734_v37 = vmax.f32 %v1445_v42, 1e-06 }
  0xa4   : > { %v869_v12 = vmul.f32 %v805_v6, %v741_v0 }
  0xa5   : > { %v887_v54 = vmul.f32 %v823_v50, %v759_v44  ;;  %v733_v44 = vmax.f32 %v1438_v38, 1e-06 }
  0xa7   : > { %v625_v43 = vpop.f32.mrf.mxu2  ;;  %v797_v50 = vmul.f32 %v733_v44, %v733_v44 }
  0xa8   : > { %v670_v45 = vpop.f32.mrf.mxu3  ;;  %v742_v60 = vmax.f32 %v625_v43, 1e-06 }
  0xa9   : > { %v1448_v47 = vpop.f32.mrf.mxu0  ;;  %v760_v48 = vmax.f32 %v670_v45, 1e-06 }
  0xaa   : > { %v608_v49 = vpop.f32.mrf.mxu1  ;;  %v806_v4 = vmul.f32 %v742_v60, %v742_v60 }
  0xab   : > { %v824_v51 = vmul.f32 %v760_v48, %v760_v48  ;;  %v735_v30 = vmax.f32 %v608_v49, 1e-06 }
  0xac   : > { %1235 = vmatmul.msk.bf16.gmra.mxu0 %vm443_vm1, %v1269_v46  ;;  %v870_v9 = vmul.f32 %v806_v4, %v742_v60 }
  0xad   : > { %v888_v52 = vmul.f32 %v824_v51, %v760_v48  ;;  %v799_v45 = vmul.f32 %v735_v30, %v735_v30  ;;  %v798_v48 = vmul.f32 %v734_v37, %v734_v37 }
  0xaf   : > { %v628_v53 = vpop.f32.mrf.mxu2  ;;  %956 = vmatpush.msrb.mxu3 %v888_v52  ;;  %v863_v52 = vmul.f32 %v799_v45, %v735_v30 }
  0xb0   : > { %v1451_v55 = vpop.f32.mrf.mxu3  ;;  %v743_v58 = vmax.f32 %v628_v53, 1e-06 }
  0xb1   : > { %v1453_v56 = vpop.f32.mrf.mxu0  ;;  %957 = vmatpush.msrb.mxu3 %v887_v54  ;;  %v862_v54 = vmul.f32 %v798_v48, %v734_v37 }
  0xb2   : > { %v610_v57 = vpop.f32.mrf.mxu1  ;;  %v807_v1 = vmul.f32 %v743_v58, %v743_v58 }
  0xb3   : > { %v736_v27 = vmax.f32 %v610_v57, 1e-06  ;;  %v861_v57 = vmul.f32 %v797_v50, %v733_v44 }
  0xb4   : > { %v871_v7 = vmul.f32 %v807_v1, %v743_v58 }
  0xb5   : > { %v800_v39 = vmul.f32 %v736_v27, %v736_v27 }
  0xb7   : > { %v630_v59 = vpop.f32.mrf.mxu2  ;;  %v864_v49 = vmul.f32 %v800_v39, %v736_v27 }
  0xb8   : > { %v744_v61 = vmax.f32 %v630_v59, 1e-06  ;;  %v1455_v62 = vpop.f32.mrf.mxu3 }
  0xb9   : > { %v1457_v63 = vpop.f32.mrf.mxu0 }
  0xba   : > { %v808_v2 = vmul.f32 %v744_v61, %v744_v61  ;;  %v613_v3 = vpop.f32.mrf.mxu1 }
  0xbb   : > { %v737_v24 = vmax.f32 %v613_v3, 1e-06 }
  0xbc   : > { %v872_v5 = vmul.f32 %v808_v2, %v744_v61 }
  0xbd   : > { %v801_v31 = vmul.f32 %v737_v24, %v737_v24 }
  0xbe   : > { %936 = vmatpush.msrb.mxu2 %v872_v5 }
  0xbf   : > { %v1459_v8 = vpop.f32.mrf.mxu2  ;;  %v865_v46 = vmul.f32 %v801_v31, %v737_v24 }
  0xc0   : > { %937 = vmatpush.msrb.mxu2 %v871_v7  ;;  %v1461_v10 = vpop.f32.mrf.mxu3 }
  0xc1   : > { %v1463_v11 = vpop.f32.mrf.mxu0 }
  0xc2   : > { %938 = vmatpush.msrb.mxu2 %v870_v9  ;;  %v615_v13 = vpop.f32.mrf.mxu1 }
  0xc3   : > { %v738_v22 = vmax.f32 %v615_v13, 1e-06 }
  0xc4   : > { %939 = vmatpush.msrb.mxu2 %v869_v12 }
  0xc5   : > { %v802_v28 = vmul.f32 %v738_v22, %v738_v22 }
  0xc7   : > { %v1465_v14 = vpop.f32.mrf.mxu2  ;;  %v866_v43 = vmul.f32 %v802_v28, %v738_v22 }
  0xc8   : > { %v1467_v15 = vpop.f32.mrf.mxu3 }
  0xc9   : > { %v1469_v16 = vpop.f32.mrf.mxu0 }
  0xca   : > { %v618_v17 = vpop.f32.mrf.mxu1 }
  0xcb   : > { %v739_v19 = vmax.f32 %v618_v17, 1e-06 }
  0xcd   : > { %v803_v25 = vmul.f32 %v739_v19, %v739_v19 }
  0xcf   : > { %v1471_v18 = vpop.f32.mrf.mxu2  ;;  %v867_v34 = vmul.f32 %v803_v25, %v739_v19 }
  0xd0   : > { %v1473_v20 = vpop.f32.mrf.mxu3 }
  0xd1   : > { %v1475_v21 = vpop.f32.mrf.mxu0 }
  0xd2   : > { %v620_v23 = vpop.f32.mrf.mxu1 }
  0xd3   : > { %v740_v26 = vmax.f32 %v620_v23, 1e-06 }
  0xd5   : > { %v804_v29 = vmul.f32 %v740_v26, %v740_v26 }
  0xd7   : > { %v1477_v32 = vpop.f32.mrf.mxu2  ;;  %v868_v33 = vmul.f32 %v804_v29, %v740_v26 }
  0xd8   : > { %v1479_v35 = vpop.f32.mrf.mxu3 }
  0xd9   : > { %v573_v40 = vpop.f32.mrf.mxu0  ;;  %940 = vmatpush.msrb.mxu2 %v868_v33 }
  0xda   : > { %v721_v48 = vmax.f32 %v573_v40, 1e-06 }
  0xdb   : > { %941 = vmatpush.msrb.mxu2 %v867_v34 }
  0xdd   : > { %942 = vmatpush.msrb.mxu2 %v866_v43 }
  0xdf   : > { %v1483_v51 = vpop.f32.mrf.mxu2  ;;  %943 = vmatpush.msrb.mxu2 %v865_v46 }
  0xe0   : > { %v1485_v53 = vpop.f32.mrf.mxu3 }
  0xe1   : > { %v575_v42 = vpop.f32.mrf.mxu0  ;;  %944 = vmatpush.msrb.mxu2 %v864_v49 }
  0xe2   : > { %v722_v44 = vmax.f32 %v575_v42, 1e-06  ;;  %v905_v42 = vld [vmem:[%s1569_s2] sm:$0xff] }
  0xe3   : > { %945 = vmatpush.msrb.mxu2 %v863_v52  ;;  %v720_v52 = vmax.f32 %v1475_v21, 1e-06  ;;  %907 = vst [vmem:[#allocation1] ss:$4 sm:$0xff] %v905_v42 }
  0xe5   : > { %946 = vmatpush.msrb.mxu2 %v862_v54  ;;  %v786_v54 = vmul.f32 %v722_v44, %v722_v44 }
  0xe7   : > { %v1487_v38 = vpop.f32.mrf.mxu2  ;;  %947 = vmatpush.msrb.mxu2 %v861_v57  ;;  %v850_v21 = vmul.f32 %v786_v54, %v722_v44 }
  0xe8   : > { %v1489_v58 = vpop.f32.mrf.mxu3 }
  0xe9   : > { %v578_v59 = vpop.f32.mrf.mxu0 }
  0xea   : > { %v723_v33 = vmax.f32 %v578_v59, 1e-06 }
  0xec   : > { %v787_v49 = vmul.f32 %v723_v33, %v723_v33 }
  0xef   : > { %v1491_v60 = vpop.f32.mrf.mxu2 }
  0xf0   : > { %v1493_v61 = vpop.f32.mrf.mxu3 }
  0xf1   : > { %v580_v0 = vpop.f32.mrf.mxu0 }
  0xf2   : > { %v724_v28 = vmax.f32 %v580_v0, 1e-06  ;;  %v719_v0 = vmax.f32 %v1469_v16, 1e-06 }
  0xf4   : > { %v788_v45 = vmul.f32 %v724_v28, %v724_v28 }
  0xf6   : > { %v852_v57 = vmul.f32 %v788_v45, %v724_v28 }
  0xf7   : > { %v1495_v1 = vpop.f32.mrf.mxu2 }
  0xf8   : > { %v1497_v2 = vpop.f32.mrf.mxu3 }
  0xf9   : > { %v583_v3 = vpop.f32.mrf.mxu0 }
  0xfa   : > { %v725_v25 = vmax.f32 %v583_v3, 1e-06  ;;  %v785_v3 = vmul.f32 %v721_v48, %v721_v48 }
  0xfc   : > { %v789_v34 = vmul.f32 %v725_v25, %v725_v25  ;;  %v849_v16 = vmul.f32 %v785_v3, %v721_v48 }
  0xfe   : > { %v853_v50 = vmul.f32 %v789_v34, %v725_v25  ;;  %v716_v25 = vmax.f32 %v1453_v56, 1e-06 }
  0xff   : > { %v1499_v4 = vpop.f32.mrf.mxu2 }
 0x100   : > { %v1501_v5 = vpop.f32.mrf.mxu3  ;;  %v780_v45 = vmul.f32 %v716_v25, %v716_v25 }
 0x101   : > { %v585_v6 = vpop.f32.mrf.mxu0 }
 0x102   : > { %v726_v23 = vmax.f32 %v585_v6, 1e-06  ;;  %v851_v6 = vmul.f32 %v787_v49, %v723_v33 }
 0x104   : > { %v790_v29 = vmul.f32 %v726_v23, %v726_v23 }
 0x106   : > { %v854_v46 = vmul.f32 %v790_v29, %v726_v23  ;;  %v717_v23 = vmax.f32 %v1457_v63, 1e-06  ;;  %v713_v29 = vmax.f32 %v1435_v36, 1e-06  ;;  %v714_v63 = vmax.f32 %v1443_v41, 1e-06 }
 0x107   : > { %v1503_v7 = vpop.f32.mrf.mxu2  ;;  %v753_v41 = vmax.f32 %v1499_v4, 1e-06 }
 0x108   : > { %v1505_v9 = vpop.f32.mrf.mxu3  ;;  %v777_v36 = vmul.f32 %v713_v29, %v713_v29 }
 0x109   : > { %v588_v12 = vpop.f32.mrf.mxu0 }
 0x10a   : > { %v727_v17 = vmax.f32 %v588_v12, 1e-06 }
 0x10c   : > { %v791_v26 = vmul.f32 %v727_v17, %v727_v17 }
 0x10e   : > { %v855_v37 = vmul.f32 %v791_v26, %v727_v17  ;;  %v718_v17 = vmax.f32 %v1463_v11, 1e-06  ;;  %v781_v11 = vmul.f32 %v717_v23, %v717_v23 }
 0x10f   : > { %v1507_v13 = vpop.f32.mrf.mxu2 }
 0x110   : > { %v1509_v19 = vpop.f32.mrf.mxu3  ;;  %v782_v26 = vmul.f32 %v718_v17, %v718_v17  ;;  %v755_v56 = vmax.f32 %v1507_v13, 1e-06  ;;  %v844_v13 = vmul.f32 %v780_v45, %v716_v25 }
 0x111   : > { %v590_v22 = vpop.f32.mrf.mxu0 }
 0x112   : > { %v728_v24 = vmax.f32 %v590_v22, 1e-06  ;;  %v784_v22 = vmul.f32 %v720_v52, %v720_v52 }
 0x114   : > { %v792_v27 = vmul.f32 %v728_v24, %v728_v24  ;;  %v848_v28 = vmul.f32 %v784_v22, %v720_v52 }
 0x116   : > { %v856_v30 = vmul.f32 %v792_v27, %v728_v24  ;;  %v783_v24 = vmul.f32 %v719_v0, %v719_v0 }
 0x117   : > { %v660_v31 = vpop.f32.mrf.mxu2 }
 0x118   : > { %916 = vmatpush.msrb.mxu1 %v856_v30  ;;  %v1511_v39 = vpop.f32.mrf.mxu3  ;;  %v715_v30 = vmax.f32 %v1448_v47, 1e-06  ;;  %v756_v34 = vmax.f32 %v660_v31, 1e-06  ;;  %v847_v44 = vmul.f32 %v783_v24, %v719_v0  ;;  %v754_v47 = vmax.f32 %v1503_v7, 1e-06 }
 0x119   : > { %v1513_v43 = vpop.f32.mrf.mxu0  ;;  %v845_v31 = vmul.f32 %v781_v11, %v717_v23  ;;  %v778_v0 = vmul.f32 %v714_v63, %v714_v63  ;;  %v841_v24 = vmul.f32 %v777_v36, %v713_v29  ;;  %v752_v7 = vmax.f32 %v1495_v1, 1e-06 }
 0x11a   : > { %917 = vmatpush.msrb.mxu1 %v855_v37  ;;  %v779_v54 = vmul.f32 %v715_v30, %v715_v30  ;;  %v774_v4 = vmax.f32 %v1511_v39, 1e-06  ;;  %v750_v29 = vmax.f32 %v1487_v38, 1e-06 }
 0x11b   : > { %v842_v11 = vmul.f32 %v778_v0, %v714_v63  ;;  %v747_v0 = vmax.f32 %v1471_v18, 1e-06  ;;  %v768_v18 = vmax.f32 %v1489_v58, 1e-06  ;;  %v766_v58 = vmax.f32 %v1479_v35, 1e-06 }
 0x11c   : > { %918 = vmatpush.msrb.mxu1 %v854_v46  ;;  %v843_v23 = vmul.f32 %v779_v54, %v715_v30  ;;  %v816_v30 = vmul.f32 %v752_v7, %v752_v7  ;;  %v748_v54 = vmax.f32 %v1477_v32, 1e-06 }
 0x11e   : > { %919 = vmatpush.msrb.mxu1 %v853_v50  ;;  %v846_v50 = vmul.f32 %v782_v26, %v718_v17  ;;  %v751_v17 = vmax.f32 %v1491_v60, 1e-06 }
 0x11f   : > { %v663_v59 = vpop.f32.mrf.mxu2 }
 0x120   : > { %920 = vmatpush.msrb.mxu1 %v852_v57  ;;  %v708_v12 = vpop.f32.mrf.mxu3  ;;  %v757_v27 = vmax.f32 %v663_v59, 1e-06  ;;  %v820_v57 = vmul.f32 %v756_v34, %v756_v34  ;;  %v815_v1 = vmul.f32 %v751_v17, %v751_v17 }
 0x121   : > { %v595_v40 = vpop.f32.mrf.mxu0 }
 0x122   : > { %921 = vmatpush.msrb.mxu1 %v851_v6  ;;  %v821_v48 = vmul.f32 %v757_v27, %v757_v27  ;;  %v819_v6 = vmul.f32 %v755_v56, %v755_v56  ;;  %v884_v26 = vmul.f32 %v820_v57, %v756_v34  ;;  %v730_v25 = vmax.f32 %v595_v40, 1e-06 }
 0x123   : > { %v729_v34 = vmax.f32 %v1513_v43, 1e-06  ;;  %v772_v40 = vmax.f32 %v1505_v9, 1e-06  ;;  %v880_v9 = vmul.f32 %v816_v30, %v752_v7 }
 0x124   : > { %922 = vmatpush.msrb.mxu1 %v850_v21  ;;  %v885_v42 = vmul.f32 %v821_v48, %v757_v27  ;;  %v775_v21 = vmax.f32 %v708_v12, 1e-06  ;;  %v883_v27 = vmul.f32 %v819_v6, %v755_v56  ;;  %v769_v6 = vmax.f32 %v1493_v61, 1e-06 }
 0x125   : > { %v793_v57 = vmul.f32 %v729_v34, %v729_v34  ;;  %v811_v61 = vmul.f32 %v747_v0, %v747_v0  ;;  %v910_v30 = vld.sshfl [vmem:[#allocation1 + $0x10] sm:$0xff pattern:$0x73625140] }
 0x126   : > { %923 = vmatpush.msrb.mxu1 %v849_v16  ;;  %v818_v16 = vmul.f32 %v754_v47, %v754_v47  ;;  %v839_v45 = vmul.f32 %v775_v21, %v775_v21 }
 0x127   : > { %v665_v33 = vpop.f32.mrf.mxu2 }
 0x128   : > { %v758_v37 = vmax.f32 %v665_v33, 1e-06  ;;  %924 = vmatpush.msrb.mxu1 %v848_v28  ;;  %v710_v52 = vpop.f32.mrf.mxu3  ;;  %v817_v28 = vmul.f32 %v753_v41, %v753_v41  ;;  %v882_v39 = vmul.f32 %v818_v16, %v754_v47  ;;  %v903_v43 = vmul.f32 %v839_v45, %v775_v21 }
 0x129   : > { %v598_v46 = vpop.f32.mrf.mxu0  ;;  %v776_v3 = vmax.f32 %v710_v52, 1e-06  ;;  %v771_v52 = vmax.f32 %v1501_v5, 1e-06  ;;  %v814_v47 = vmul.f32 %v750_v29, %v750_v29  ;;  %v879_v5 = vmul.f32 %v815_v1, %v751_v17 }
 0x12a   : > { %v822_v49 = vmul.f32 %v758_v37, %v758_v37  ;;  %925 = vmatpush.msrb.mxu1 %v847_v44  ;;  %v731_v22 = vmax.f32 %v598_v46, 1e-06  ;;  %v773_v44 = vmax.f32 %v1509_v19, 1e-06  ;;  %v838_v46 = vmul.f32 %v774_v4, %v774_v4 }
 0x12b   : > { %v840_v33 = vmul.f32 %v776_v3, %v776_v3  ;;  %v881_v56 = vmul.f32 %v817_v28, %v753_v41  ;;  %v835_v32 = vmul.f32 %v771_v52, %v771_v52  ;;  %v857_v21 = vmul.f32 %v793_v57, %v729_v34  ;;  %v908_v17 = vld.sshfl [vmem:[#allocation1] sm:$0xff pattern:$0x73625140] }
 0x12c   : > { %926 = vmatpush.msrb.mxu1 %v846_v50  ;;  %v886_v59 = vmul.f32 %v822_v49, %v758_v37  ;;  %v795_v60 = vmul.f32 %v731_v22, %v731_v22  ;;  %v749_v49 = vmax.f32 %v1483_v51, 1e-06  ;;  %v794_v50 = vmul.f32 %v730_v25, %v730_v25 }
 0x12d   : > { %v904_v48 = vmul.f32 %v840_v33, %v776_v3  ;;  %v837_v36 = vmul.f32 %v773_v44, %v773_v44  ;;  %v836_v51 = vmul.f32 %v772_v40, %v772_v40  ;;  %v833_v28 = vmul.f32 %v769_v6, %v769_v6 }
 0x12e   : > { %927 = vmatpush.msrb.mxu1 %v845_v31  ;;  %958 = vmatpush.msrb.mxu3 %v886_v59  ;;  %v859_v19 = vmul.f32 %v795_v60, %v731_v22  ;;  %v770_v31 = vmax.f32 %v1497_v2, 1e-06  ;;  %v902_v59 = vmul.f32 %v838_v46, %v774_v4  ;;  %v813_v41 = vmul.f32 %v749_v49, %v749_v49 }
 0x12f   : > { %v858_v3 = vmul.f32 %v794_v50, %v730_v25  ;;  %v812_v22 = vmul.f32 %v748_v54, %v748_v54  ;;  %v878_v2 = vmul.f32 %v814_v47, %v750_v29  ;;  %v900_v16 = vmul.f32 %v836_v51, %v772_v40 }
 0x130   : > { %928 = vmatpush.msrb.mxu1 %v844_v13  ;;  %959 = vmatpush.msrb.mxu3 %v885_v42  ;;  %v901_v13 = vmul.f32 %v837_v36, %v773_v44  ;;  %v746_v42 = vmax.f32 %v1465_v14, 1e-06  ;;  %v834_v7 = vmul.f32 %v770_v31, %v770_v31  ;;  %v767_v14 = vmax.f32 %v1485_v53, 1e-06 }
 0x131   : > { %v600_v37 = vpop.f32.mrf.mxu0  ;;  %v899_v4 = vmul.f32 %v835_v32, %v771_v52  ;;  %v765_v60 = vmax.f32 %v1473_v20, 1e-06  ;;  %v897_v53 = vmul.f32 %v833_v28, %v769_v6  ;;  %v764_v1 = vmax.f32 %v1467_v15, 1e-06 }
 0x132   : > { %929 = vmatpush.msrb.mxu1 %v843_v23  ;;  %960 = vmatpush.msrb.mxu3 %v884_v26  ;;  %v732_v12 = vmax.f32 %v600_v37, 1e-06  ;;  %v745_v23 = vmax.f32 %v1459_v8, 1e-06  ;;  %v877_v26 = vmul.f32 %v813_v41, %v749_v49  ;;  %v810_v33 = vmul.f32 %v746_v42, %v746_v42 }
 0x133   : > { %v832_v37 = vmul.f32 %v768_v18, %v768_v18  ;;  %v898_v25 = vmul.f32 %v834_v7, %v770_v31  ;;  %v830_v44 = vmul.f32 %v766_v58, %v766_v58  ;;  %v763_v34 = vmax.f32 %v1461_v10, 1e-06  ;;  %v1311_v31 = vld [vmem:[%s1570_s3] ss:$0 sm:$0xff] }
 0x134   : > { %930 = vmatpush.msrb.mxu1 %v842_v11  ;;  %961 = vmatpush.msrb.mxu3 %v883_v27  ;;  %v796_v63 = vmul.f32 %v732_v12, %v732_v12  ;;  %v876_v11 = vmul.f32 %v812_v22, %v748_v54  ;;  %v809_v8 = vmul.f32 %v745_v23, %v745_v23  ;;  %v762_v20 = vmax.f32 %v1455_v62, 1e-06  ;;  %v911_v62 = vld.sshfl [vmem:[#allocation1 + $0x18] sm:$0xff pattern:$0x73625140] }
 0x135   : > { %v875_v27 = vmul.f32 %v811_v61, %v747_v0  ;;  %v874_v29 = vmul.f32 %v810_v33, %v746_v42  ;;  %v896_v45 = vmul.f32 %v832_v37, %v768_v18  ;;  %v828_v40 = vmul.f32 %v764_v1, %v764_v1 }
 0x136   : > { %931 = vmatpush.msrb.mxu1 %v841_v24  ;;  %962 = vmatpush.msrb.mxu3 %v882_v39  ;;  %v860_v38 = vmul.f32 %v796_v63, %v732_v12  ;;  %v909_v24 = vld.sshfl [vmem:[#allocation1 + $0x8] sm:$0xff pattern:$0x73625140]  ;;  %v831_v12 = vmul.f32 %v767_v14, %v767_v14  ;;  %v873_v35 = vmul.f32 %v809_v8, %v745_v23  ;;  %v761_v15 = vmax.f32 %v1451_v55, 1e-06 }
 0x137   : > { %932 = vmatmul.f32.vlgmr.msrb.gmra.mxu1 %v908_v17  ;;  %v829_v39 = vmul.f32 %v765_v60, %v765_v60  ;;  %v894_v46 = vmul.f32 %v830_v44, %v766_v58  ;;  %v826_v49 = vmul.f32 %v762_v20, %v762_v20  ;;  %v892_v50 = vmul.f32 %v828_v40, %v764_v1  ;;  %v996_v55 = vld [vmem:[%s1570_s3] sm:$0x1] }
 0x138   : > { %976 = vmatpush.msra.mxu1 %v904_v48  ;;  %963 = vmatpush.msrb.mxu3 %v881_v56  ;;  %v895_v63 = vmul.f32 %v831_v12, %v767_v14  ;;  %v827_v48 = vmul.f32 %v763_v34, %v763_v34  ;;  %v1001_v57 = vsub.f32 1.0, %v996_v55 }
 0x139   : > { %948 = vmatpush.msrb.mxu2 %v860_v38  ;;  %v893_v56 = vmul.f32 %v829_v39, %v765_v60  ;;  %v825_v38 = vmul.f32 %v761_v15, %v761_v15 }
 0x13a   : > { %977 = vmatpush.msra.mxu1 %v903_v43  ;;  %964 = vmatpush.msrb.mxu3 %v880_v9  ;;  %v891_v10 = vmul.f32 %v827_v48, %v763_v34  ;;  %v1003_v0 = vperm.slane %v1001_v57, 0 }
 0x13b   : > { %949 = vmatpush.msrb.mxu2 %v859_v19  ;;  %v890_v19 = vmul.f32 %v826_v49, %v762_v20  ;;  %v889_v52 = vmul.f32 %v825_v38, %v761_v15 }
 0x13c   : > { %978 = vmatpush.msra.mxu1 %v902_v59  ;;  %965 = vmatpush.msrb.mxu3 %v879_v5 }
 0x13d   : > { %950 = vmatpush.msrb.mxu2 %v858_v3 }
 0x13e   : > { %979 = vmatpush.msra.mxu1 %v901_v13  ;;  %966 = vmatpush.msrb.mxu3 %v878_v2 }
 0x13f   : > { %951 = vmatpush.msrb.mxu2 %v857_v21 }
 0x140   : > { %980 = vmatpush.msra.mxu1 %v900_v16  ;;  %952 = vmatmul.f32.vlgmr.msrb.gmra.mxu2 %v909_v24 }
 0x141   : > { %967 = vmatpush.msrb.mxu3 %v877_v26 }
 0x142   : > { %981 = vmatpush.msra.mxu1 %v899_v4 }
 0x143   : > { %968 = vmatpush.msrb.mxu3 %v876_v11 }
 0x144   : > { %982 = vmatpush.msra.mxu1 %v898_v25 }
 0x145   : > { %969 = vmatpush.msrb.mxu3 %v875_v27 }
 0x146   : > { %983 = vmatpush.msra.mxu1 %v897_v53 }
 0x147   : > { %970 = vmatpush.msrb.mxu3 %v874_v29 }
 0x148   : > { %984 = vmatpush.msra.mxu1 %v896_v45 }
 0x149   : > { %971 = vmatpush.msrb.mxu3 %v873_v35 }
 0x14a   : > { %985 = vmatpush.msra.mxu1 %v895_v63  ;;  %972 = vmatmul.f32.vlgmr.msrb.gmra.mxu3 %v910_v30 }
 0x14c   : > { %986 = vmatpush.msra.mxu1 %v894_v46 }
 0x14e   : > { %987 = vmatpush.msra.mxu1 %v893_v56 }
 0x150   : > { %988 = vmatpush.msra.mxu1 %v892_v50 }
 0x152   : > { %989 = vmatpush.msra.mxu1 %v891_v10 }
 0x154   : > { %990 = vmatpush.msra.mxu1 %v890_v19 }
 0x156   : > { %991 = vmatpush.msra.mxu1 %v889_v52 }
 0x157   : > { %992 = vmatmul.f32.vlgmr.msra.gmra.mxu1 %v911_v62 }
 0x1b4   : > { %v933_v36 = vpop.f32.mrf.mxu1 }
 0x1c3   : > { %v953_v43 = vpop.f32.mrf.mxu2 }
 0x1c4   : > { %v954_v54 = vadd.f32 %v953_v43, %v933_v36 }
 0x1cd   : > { %v973_v47 = vpop.f32.mrf.mxu3 }
 0x1ce   : > { %v974_v9 = vadd.f32 %v973_v47, %v954_v54 }
 0x1d4   : > { %v993_v51 = vpop.f32.mrf.mxu1 }
 0x1d5   : > { %v994_v59 = vadd.f32 %v993_v51, %v974_v9 }
 0x1d7   : > { %v1000_v41 = vmul.f32 %v1311_v31, %v994_v59 }
 0x1d9   : > { %v1005_v5 = vadd.f32 %v1003_v0, %v1000_v41 }
 0x1db   : > { %1312 = vlog2.f32 %v1005_v5 }
 0x1e1   : > { %v1313_v3 = vpop.eup %1312 }
 0x1e2   : > { %v1007_v6 = vmul.f32 0.6931472, %v1313_v3 }
 0x1e4   : > { %v1008_v32 = vmul.f32 0.33333334, %v1007_v6 }
 0x1e6   : > { %v1009_v13 = vmul.f32 1.442695, %v1008_v32 }
 0x1e8   : > { %1314 = vpow2.f32 %v1009_v13 }
 0x1ee   : > { %v1315_v42 = vpop.eup %1314 }
 0x1ef   : > { %v1011_v22 = vmul.f32 %v1315_v42, %v1311_v31 }
 0x1f1   : > { %v1012_v2 = vmul.f32 %v1011_v22, %v1011_v22 }
 0x1f3   : > { %v1013_v21 = vsel %vm540_vm0, %v1012_v2, 0.0 }
 0x1f4   : > { %1014 = vadd.xlane.f32.xlu0 %v1013_v21 }
 0x267   : > { %v1015_v24 = vpop.xlane.xlu0 %1014 }
 0x268   : > { %v1016_v18 = vmax.f32 %v1015_v24, 1e-24 }
 0x26a   : > { %1316 = vrsqrt.f32 %v1016_v18  ;;  %vm1023_vm3 = vweird.f32 %v1016_v18 }
 0x270   : > { %v1317_v7 = vpop.eup %1316 }
 0x271   : > { %v1018_v16 = vmul.f32 %v1317_v7, %v1016_v18  ;;  %vm1024_vm2 = vweird.f32 %v1317_v7 }
 0x272   : > { %vm1025_vm4 = vmor %vm1023_vm3, %vm1024_vm2 }
 0x273   : > { %v1019_v17 = vmul.f32 %v1317_v7, %v1018_v16 }
 0x275   : > { %v1020_v23 = vmul.f32 0.5, %v1019_v17 }
 0x277   : > { %v1021_v61 = vsub.f32 1.5, %v1020_v23 }
 0x279   : > { %v1022_v26 = vmul.f32 %v1317_v7, %v1021_v61 }
 0x27b   : > { %v1026_v14 = vsel %vm1025_vm4, %v1317_v7, %v1022_v26 }
 0x27c   : > { %v1027_v28 = vmul.f32 %v1026_v14, %v1011_v22 }
 0x27e   : > { %1028 = vst [vmem:[%s197_s11] sm:$0x3] %v1027_v28 }
 0x27f PF: > { %s14_s15 = sadd.s32 1, %s1324_s15  }
 0x280   : > { %p11_p5 = scmp.ge.s32.totalorder %s14_s15, 4  }
 0x282   :  { %13 = sbr.rel (!%p11_p5) target bundleno = 1 (0x1), region = 66 }

</bundles_post_ra>
